<compile_context>
chip_gen: v7x
topology: tpu7x:2x2x1
jax: 0.10.0
libtpu: 0.0.40
codegen_flags: <defaults>
</compile_context>

<pallas_src>
import functools

import jax
import jax.numpy as jnp
from jax.experimental import pallas as pl
from jax.experimental.pallas import tpu as pltpu


def lstm_classifier_kernel(x_ref, h0_ref, c0_ref,
                           wih8_ref, w8_ref, b8_ref,
                           wfc_ref, bfc_ref,
                           out_ref):
    """Fused 2-layer LSTM (staircase) -> fc -> log-softmax forward.

    x_ref:    ((S+1)*B, E) flattened seq-major input; row block [t*B,(t+1)*B)
                           is timestep t (bit-identical to torch's
                           x.reshape(S,B,E) of a (B,S,E) tensor); last block
                           is a zero pad consumed by the final staircase stage.
    h0_ref/c0_ref: (2, B, H) initial LSTM state (layer 0, layer 1).
    wih8_ref: (E, 8H)  layer-0 input weight placed into layer-0 gate columns
                       of the fused [i0 i1 f0 f1 o0 o1 g0 g1] layout, zeros in
                       layer-1 columns.
    w8_ref:   (2H, 8H) fused recurrence weight: rows [0:H] multiply h_a
                       (whh0 -> layer-0 cols, wih1 -> layer-1 cols),
                       rows [H:2H] multiply h_b (whh1 -> layer-1 cols, zeros
                       in layer-0 cols).
    b8_ref:   (1, 8H)  b0 in layer-0 gate columns, b1 in layer-1 gate columns.
    wfc_ref:  (H, CP)  fc weight, zero-padded to lane-dense CP (multiple of 128).
    bfc_ref:  (1, CP)  fc bias, padding columns = -1e30 (vanish in softmax).
    out_ref:  (B, CP)  padded log-softmax output (real classes in [:, :C]).
    """
    B = h0_ref.shape[1]
    H = h0_ref.shape[2]
    S = x_ref.shape[0] // B - 1

    # ---- Hoisted layer-0 input projection + fused biases: one MXU pass, off
    # the serial chain.  Kept as an SSA value (tiny), sliced statically below.
    xg8 = jnp.dot(x_ref[...], wih8_ref[...],
                  preferred_element_type=jnp.float32) + b8_ref[...]

    w8 = w8_ref[...]

    # Packed carries: [:, :H] = layer-0 (h_a, c_a), [:, H:] = layer-1 (h_b, c_b).
    h = jnp.concatenate([h0_ref[0], h0_ref[1]], axis=1)
    c = jnp.concatenate([c0_ref[0], c0_ref[1]], axis=1)

    h_final = None
    # ---- Staircase recurrence, fully unrolled (S small & static).
    # Stage k: layer-0 cell for t=k (valid for k < S) and layer-1 cell for
    # t=k-1 (valid for k > 0).  Both consume the carry computed at stage k-1.
    for k in range(S + 1):
        z = jnp.dot(h, w8, preferred_element_type=jnp.float32) \
            + xg8[k * B:(k + 1) * B, :]                     # (B, 8H)
        sig = jax.nn.sigmoid(z[:, :6 * H])                  # [i0 i1 f0 f1 o0 o1]
        g = jnp.tanh(z[:, 6 * H:])                          # [g0 g1]
        i = sig[:, :2 * H]
        f = sig[:, 2 * H:4 * H]
        o = sig[:, 4 * H:6 * H]
        c_new = f * c + i * g                               # packed (B, 2H)
        h_new = o * jnp.tanh(c_new)
        if k == 0:
            # Only the layer-0 half is a real cell at the first stage.
            h = jnp.concatenate([h_new[:, :H], h[:, H:]], axis=1)
            c = jnp.concatenate([c_new[:, :H], c[:, H:]], axis=1)
        elif k == S:
            # Only the layer-1 half is real at the last stage: it is the final
            # hidden state of the last layer (torch's x_hid[0][-1]).
            h_final = h_new[:, H:]
        else:
            h, c = h_new, c_new

    # ---- Dropout (eval-mode identity) -> fc -> LogSoftmax over the lane axis.
    # TODO(synk): training-mode dropout (p=0.5 Bernoulli mask) not applied;
    #             deterministic eval-mode forward only.
    logits = jnp.dot(h_final, wfc_ref[...],
                     preferred_element_type=jnp.float32) + bfc_ref[...]
    m = jnp.max(logits, axis=1, keepdims=True)
    shifted = logits - m
    lse = jnp.log(jnp.sum(jnp.exp(shifted), axis=1, keepdims=True))
    out_ref[...] = shifted - lse


def init_params(key, embedding_dim, hidden_dim, num_classes):
    """Deterministic parameter init mirroring the module's __init__ (PyTorch layout)."""
    ks = jax.random.split(key, 8)

    def xavier_normal(k, shape):
        fan_out, fan_in = shape
        std = jnp.sqrt(2.0 / (fan_in + fan_out))
        return jax.random.normal(k, shape, jnp.float32) * std

    H, E, C = hidden_dim, embedding_dim, num_classes
    return {
        # LSTM layer 0 (PyTorch gate-row order i, f, g, o)
        "wih0": xavier_normal(ks[0], (4 * H, E)),
        "whh0": xavier_normal(ks[1], (4 * H, H)),
        "b0": jnp.zeros((4 * H,), jnp.float32),      # b_ih + b_hh, both zero-init
        # LSTM layer 1
        "wih1": xavier_normal(ks[2], (4 * H, H)),
        "whh1": xavier_normal(ks[3], (4 * H, H)),
        "b1": jnp.zeros((4 * H,), jnp.float32),
        # fc (PyTorch default: U(-1/sqrt(H), 1/sqrt(H)))
        "wfc": jax.random.uniform(ks[4], (C, H), jnp.float32,
                                  -1.0 / jnp.sqrt(H), 1.0 / jnp.sqrt(H)),
        "bfc": jax.random.uniform(ks[5], (C,), jnp.float32,
                                  -1.0 / jnp.sqrt(H), 1.0 / jnp.sqrt(H)),
    }


def prepare_params(params):
    """ONE-TIME host-side prep: build the fused staircase weights.

    Gate-column layout along the 8H axis (all sigmoid gates contiguous, tanh
    gates last, layer-0/layer-1 interleaved per gate so the cell updates act
    on packed (B, 2H) carries with no per-step concat):
        [ i0 | i1 | f0 | f1 | o0 | o1 | g0 | g1 ]   (each block H wide)
    Also transposes for row-major matmuls and pads fc to a lane-dense width so
    the kernel's output store is unmasked on the lane axis.
    """
    H = params["whh0"].shape[1]
    E = params["wih0"].shape[1]
    C = params["wfc"].shape[0]
    CP = max(128, ((C + 127) // 128) * 128)

    col = {("i", 0): 0 * H, ("i", 1): 1 * H,
           ("f", 0): 2 * H, ("f", 1): 3 * H,
           ("o", 0): 4 * H, ("o", 1): 5 * H,
           ("g", 0): 6 * H, ("g", 1): 7 * H}

    def place(dst, w, layer):
        # w: PyTorch-layout (4H, in_dim) with gate-row blocks (i, f, g, o)
        i, f, g, o = jnp.split(w, 4, axis=0)
        for name, blk in (("i", i), ("f", f), ("o", o), ("g", g)):
            off = col[(name, layer)]
            dst = dst.at[:, off:off + H].set(blk.T)
        return dst

    def place_bias(dst, b, layer):
        i, f, g, o = jnp.split(b, 4)
        for name, blk in (("i", i), ("f", f), ("o", o), ("g", g)):
            off = col[(name, layer)]
            dst = dst.at[0, off:off + H].set(blk)
        return dst

    # Layer-0 input projection -> layer-0 gate columns only.
    wih0_8 = place(jnp.zeros((E, 8 * H), jnp.float32), params["wih0"], 0)

    # Fused recurrence weight W8: rows [0:H] multiply h_a, rows [H:2H] multiply h_b.
    top = place(place(jnp.zeros((H, 8 * H), jnp.float32), params["whh0"], 0),
                params["wih1"], 1)
    bot = place(jnp.zeros((H, 8 * H), jnp.float32), params["whh1"], 1)
    w8 = jnp.concatenate([top, bot], axis=0)                      # (2H, 8H)

    # Fused bias row: b0 into layer-0 columns, b1 into layer-1 columns.
    bias8 = place_bias(place_bias(jnp.zeros((1, 8 * H), jnp.float32),
                                  params["b0"], 0),
                       params["b1"], 1)

    wfc_p = jnp.zeros((H, CP), jnp.float32).at[:, :C].set(params["wfc"].T)
    bfc_p = jnp.full((1, CP), -1e30, jnp.float32).at[0, :C].set(params["bfc"])
    return {"wih0_8": wih0_8, "w8": w8, "bias8": bias8,
            "wfc": wfc_p, "bfc": bfc_p}


@functools.partial(jax.jit, static_argnames=("num_classes",))
def classifier_forward(x, kparams, h0, c0, *, num_classes):
    """x: (B, S, E) float32.  Returns (B, num_classes) log-probabilities."""
    B, S, E = x.shape
    CP = kparams["wfc"].shape[1]

    # torch does x.reshape(S, B, E): a row-major *reshape*, NOT a transpose, so
    # flattening to (S*B, E) is bit-identical; row block [t*B,(t+1)*B) is
    # timestep t.  One zero timestep is appended so the staircase's last stage
    # reads a valid (discarded) layer-0 row block.
    x2d = jnp.concatenate(
        [jnp.reshape(x, (B * S, E)), jnp.zeros((B, E), x.dtype)], axis=0)

    vmem = pl.BlockSpec(memory_space=pltpu.MemorySpace.VMEM)
    out = pl.pallas_call(
        lstm_classifier_kernel,
        out_shape=jax.ShapeDtypeStruct((B, CP), jnp.float32),
        in_specs=[vmem] * 8,
        out_specs=vmem,
    )(x2d, h0, c0,
      kparams["wih0_8"], kparams["w8"], kparams["bias8"],
      kparams["wfc"], kparams["bfc"])
    return out[:, :num_classes]


def reference_forward(x, params, h0, c0):
    """Pure-JAX reference of the module's forward (eval-mode dropout)."""
    B, S, E = x.shape
    xs = jnp.reshape(x, (S, B, E))          # mirrors torch's reshape

    def cell(x_t, h, c, wih, whh, b):
        gates = x_t @ wih.T + h @ whh.T + b
        i, f, g, o = jnp.split(gates, 4, axis=1)
        i, f, o = jax.nn.sigmoid(i), jax.nn.sigmoid(f), jax.nn.sigmoid(o)
        g = jnp.tanh(g)
        c = f * c + i * g
        h = o * jnp.tanh(c)
        return h, c

    h_a, c_a, h_b, c_b = h0[0], c0[0], h0[1], c0[1]
    for t in range(S):
        h_a, c_a = cell(xs[t], h_a, c_a, params["wih0"], params["whh0"], params["b0"])
        h_b, c_b = cell(h_a, h_b, c_b, params["wih1"], params["whh1"], params["b1"])
    logits = h_b @ params["wfc"].T + params["bfc"]
    return jax.nn.log_softmax(logits, axis=1)


if __name__ == "__main__":
    # Small shapes consistent with the module's forward.
    batch, seq, embedding_dim, hidden_dim, num_classes = 2, 8, 32, 32, 8

    key = jax.random.PRNGKey(0)
    k_x, k_h, k_c, k_p = jax.random.split(key, 4)

    x = jax.random.normal(k_x, (batch, seq, embedding_dim), jnp.float32)
    params = init_params(k_p, embedding_dim, hidden_dim, num_classes)
    kparams = prepare_params(params)   # one-time fuse / transpose / gate-permute / pad

    # _init_state: h0, c0 ~ N(0, 0.01) of shape (num_layers=2, B, H)
    h0 = jax.random.normal(k_h, (2, batch, hidden_dim), jnp.float32) * 0.01
    c0 = jax.random.normal(k_c, (2, batch, hidden_dim), jnp.float32) * 0.01

    out = classifier_forward(x, kparams, h0, c0, num_classes=num_classes)
    jax.block_until_ready(out)

    assert out.shape == (batch, num_classes)
    # log-softmax rows should sum to ~1 after exp
    assert jnp.allclose(jnp.exp(out).sum(axis=1), 1.0, atol=1e-4)
    # cross-check against a pure-JAX reference of the same forward pass
    ref = reference_forward(x, params, h0, c0)
    assert jnp.allclose(out, ref, atol=1e-2, rtol=1e-2)
    print("KERNEL_OK")
</pallas_src>

<mosaic_0001>
module attributes {stable_mosaic.version = 11 : i64} {
  func.func @lstm_classifier_kernel(%arg0: memref<18x32xf32, #tpu.memory_space<vmem>>, %arg1: memref<2x2x32xf32, #tpu.memory_space<vmem>>, %arg2: memref<2x2x32xf32, #tpu.memory_space<vmem>>, %arg3: memref<32x256xf32, #tpu.memory_space<vmem>>, %arg4: memref<64x256xf32, #tpu.memory_space<vmem>>, %arg5: memref<1x256xf32, #tpu.memory_space<vmem>>, %arg6: memref<32x128xf32, #tpu.memory_space<vmem>>, %arg7: memref<1x128xf32, #tpu.memory_space<vmem>>, %arg8: memref<2x128xf32, #tpu.memory_space<vmem>>) attributes {dimension_semantics = [], scalar_prefetch = 0 : i64, scratch_operands = 0 : i64, tpu.core_type = #tpu.core_type<tc>} {
    %c0 = arith.constant 0 : index
    %c0_0 = arith.constant 0 : index
    %0 = vector.load %arg0[%c0, %c0_0] : memref<18x32xf32, #tpu.memory_space<vmem>>, vector<18x32xf32>
    %c0_1 = arith.constant 0 : index
    %c0_2 = arith.constant 0 : index
    %1 = vector.load %arg3[%c0_1, %c0_2] : memref<32x256xf32, #tpu.memory_space<vmem>>, vector<32x256xf32>
    %cst = arith.constant dense<0.000000e+00> : vector<18x256xf32>
    %2 = tpu.matmul %0, %1, %cst {dimension_numbers = #tpu.dot_dimension_numbers<[1], [0], [0], [1], [0, 0, 1, 1], [], []>} : vector<18x32xf32>, vector<32x256xf32>, vector<18x256xf32> -> vector<18x256xf32>
    %c0_3 = arith.constant 0 : index
    %c0_4 = arith.constant 0 : index
    %3 = vector.load %arg5[%c0_3, %c0_4] : memref<1x256xf32, #tpu.memory_space<vmem>>, vector<1x256xf32>
    %4 = vector.broadcast %3 : vector<1x256xf32> to vector<18x256xf32>
    %5 = arith.addf %2, %4 : vector<18x256xf32>
    %c0_5 = arith.constant 0 : index
    %c0_6 = arith.constant 0 : index
    %6 = vector.load %arg4[%c0_5, %c0_6] : memref<64x256xf32, #tpu.memory_space<vmem>>, vector<64x256xf32>
    %c0_7 = arith.constant 0 : index
    %c0_8 = arith.constant 0 : index
    %c0_9 = arith.constant 0 : index
    %7 = vector.load %arg1[%c0_7, %c0_8, %c0_9] : memref<2x2x32xf32, #tpu.memory_space<vmem>>, vector<1x2x32xf32>
    %8 = vector.shape_cast %7 : vector<1x2x32xf32> to vector<2x32xf32>
    %c1 = arith.constant 1 : index
    %c0_10 = arith.constant 0 : index
    %c0_11 = arith.constant 0 : index
    %9 = vector.load %arg1[%c1, %c0_10, %c0_11] : memref<2x2x32xf32, #tpu.memory_space<vmem>>, vector<1x2x32xf32>
    %10 = vector.shape_cast %9 : vector<1x2x32xf32> to vector<2x32xf32>
    %11 = tpu.concatenate %8, %10 in 1 : vector<2x32xf32>, vector<2x32xf32> -> vector<2x64xf32>
    %c0_12 = arith.constant 0 : index
    %c0_13 = arith.constant 0 : index
    %c0_14 = arith.constant 0 : index
    %12 = vector.load %arg2[%c0_12, %c0_13, %c0_14] : memref<2x2x32xf32, #tpu.memory_space<vmem>>, vector<1x2x32xf32>
    %13 = vector.shape_cast %12 : vector<1x2x32xf32> to vector<2x32xf32>
    %c1_15 = arith.constant 1 : index
    %c0_16 = arith.constant 0 : index
    %c0_17 = arith.constant 0 : index
    %14 = vector.load %arg2[%c1_15, %c0_16, %c0_17] : memref<2x2x32xf32, #tpu.memory_space<vmem>>, vector<1x2x32xf32>
    %15 = vector.shape_cast %14 : vector<1x2x32xf32> to vector<2x32xf32>
    %16 = tpu.concatenate %13, %15 in 1 : vector<2x32xf32>, vector<2x32xf32> -> vector<2x64xf32>
    %cst_18 = arith.constant dense<0.000000e+00> : vector<2x256xf32>
    %17 = tpu.matmul %11, %6, %cst_18 {dimension_numbers = #tpu.dot_dimension_numbers<[1], [0], [0], [1], [0, 0, 1, 1], [], []>} : vector<2x64xf32>, vector<64x256xf32>, vector<2x256xf32> -> vector<2x256xf32>
    %18 = vector.extract_strided_slice %5 {offsets = [0, 0], sizes = [2, 256], strides = [1, 1]} : vector<18x256xf32> to vector<2x256xf32>
    %19 = arith.addf %17, %18 : vector<2x256xf32>
    %20 = vector.extract_strided_slice %19 {offsets = [0, 0], sizes = [2, 192], strides = [1, 1]} : vector<2x256xf32> to vector<2x192xf32>
    %21 = arith.negf %20 : vector<2x192xf32>
    %22 = math.exp %21 : vector<2x192xf32>
    %cst_19 = arith.constant 1.000000e+00 : f32
    %23 = vector.broadcast %cst_19 : f32 to vector<2x192xf32>
    %24 = arith.addf %23, %22 : vector<2x192xf32>
    %25 = arith.divf %23, %24 : vector<2x192xf32>
    %26 = vector.extract_strided_slice %19 {offsets = [0, 192], sizes = [2, 64], strides = [1, 1]} : vector<2x256xf32> to vector<2x64xf32>
    %27 = math.tanh %26 : vector<2x64xf32>
    %28 = vector.extract_strided_slice %25 {offsets = [0, 0], sizes = [2, 64], strides = [1, 1]} : vector<2x192xf32> to vector<2x64xf32>
    %29 = vector.extract_strided_slice %25 {offsets = [0, 64], sizes = [2, 64], strides = [1, 1]} : vector<2x192xf32> to vector<2x64xf32>
    %30 = vector.extract_strided_slice %25 {offsets = [0, 128], sizes = [2, 64], strides = [1, 1]} : vector<2x192xf32> to vector<2x64xf32>
    %31 = arith.mulf %29, %16 : vector<2x64xf32>
    %32 = arith.mulf %28, %27 : vector<2x64xf32>
    %33 = arith.addf %31, %32 : vector<2x64xf32>
    %34 = math.tanh %33 : vector<2x64xf32>
    %35 = arith.mulf %30, %34 : vector<2x64xf32>
    %36 = vector.extract_strided_slice %35 {offsets = [0, 0], sizes = [2, 32], strides = [1, 1]} : vector<2x64xf32> to vector<2x32xf32>
    %37 = vector.extract_strided_slice %11 {offsets = [0, 32], sizes = [2, 32], strides = [1, 1]} : vector<2x64xf32> to vector<2x32xf32>
    %38 = tpu.concatenate %36, %37 in 1 : vector<2x32xf32>, vector<2x32xf32> -> vector<2x64xf32>
    %39 = vector.extract_strided_slice %33 {offsets = [0, 0], sizes = [2, 32], strides = [1, 1]} : vector<2x64xf32> to vector<2x32xf32>
    %40 = vector.extract_strided_slice %16 {offsets = [0, 32], sizes = [2, 32], strides = [1, 1]} : vector<2x64xf32> to vector<2x32xf32>
    %41 = tpu.concatenate %39, %40 in 1 : vector<2x32xf32>, vector<2x32xf32> -> vector<2x64xf32>
    %cst_20 = arith.constant dense<0.000000e+00> : vector<2x256xf32>
    %42 = tpu.matmul %38, %6, %cst_20 {dimension_numbers = #tpu.dot_dimension_numbers<[1], [0], [0], [1], [0, 0, 1, 1], [], []>} : vector<2x64xf32>, vector<64x256xf32>, vector<2x256xf32> -> vector<2x256xf32>
    %43 = vector.extract_strided_slice %5 {offsets = [2, 0], sizes = [2, 256], strides = [1, 1]} : vector<18x256xf32> to vector<2x256xf32>
    %44 = arith.addf %42, %43 : vector<2x256xf32>
    %45 = vector.extract_strided_slice %44 {offsets = [0, 0], sizes = [2, 192], strides = [1, 1]} : vector<2x256xf32> to vector<2x192xf32>
    %46 = arith.negf %45 : vector<2x192xf32>
    %47 = math.exp %46 : vector<2x192xf32>
    %cst_21 = arith.constant 1.000000e+00 : f32
    %48 = vector.broadcast %cst_21 : f32 to vector<2x192xf32>
    %49 = arith.addf %48, %47 : vector<2x192xf32>
    %50 = arith.divf %48, %49 : vector<2x192xf32>
    %51 = vector.extract_strided_slice %44 {offsets = [0, 192], sizes = [2, 64], strides = [1, 1]} : vector<2x256xf32> to vector<2x64xf32>
    %52 = math.tanh %51 : vector<2x64xf32>
    %53 = vector.extract_strided_slice %50 {offsets = [0, 0], sizes = [2, 64], strides = [1, 1]} : vector<2x192xf32> to vector<2x64xf32>
    %54 = vector.extract_strided_slice %50 {offsets = [0, 64], sizes = [2, 64], strides = [1, 1]} : vector<2x192xf32> to vector<2x64xf32>
    %55 = vector.extract_strided_slice %50 {offsets = [0, 128], sizes = [2, 64], strides = [1, 1]} : vector<2x192xf32> to vector<2x64xf32>
    %56 = arith.mulf %54, %41 : vector<2x64xf32>
    %57 = arith.mulf %53, %52 : vector<2x64xf32>
    %58 = arith.addf %56, %57 : vector<2x64xf32>
    %59 = math.tanh %58 : vector<2x64xf32>
    %60 = arith.mulf %55, %59 : vector<2x64xf32>
    %cst_22 = arith.constant dense<0.000000e+00> : vector<2x256xf32>
    %61 = tpu.matmul %60, %6, %cst_22 {dimension_numbers = #tpu.dot_dimension_numbers<[1], [0], [0], [1], [0, 0, 1, 1], [], []>} : vector<2x64xf32>, vector<64x256xf32>, vector<2x256xf32> -> vector<2x256xf32>
    %62 = vector.extract_strided_slice %5 {offsets = [4, 0], sizes = [2, 256], strides = [1, 1]} : vector<18x256xf32> to vector<2x256xf32>
    %63 = arith.addf %61, %62 : vector<2x256xf32>
    %64 = vector.extract_strided_slice %63 {offsets = [0, 0], sizes = [2, 192], strides = [1, 1]} : vector<2x256xf32> to vector<2x192xf32>
    %65 = arith.negf %64 : vector<2x192xf32>
    %66 = math.exp %65 : vector<2x192xf32>
    %cst_23 = arith.constant 1.000000e+00 : f32
    %67 = vector.broadcast %cst_23 : f32 to vector<2x192xf32>
    %68 = arith.addf %67, %66 : vector<2x192xf32>
    %69 = arith.divf %67, %68 : vector<2x192xf32>
    %70 = vector.extract_strided_slice %63 {offsets = [0, 192], sizes = [2, 64], strides = [1, 1]} : vector<2x256xf32> to vector<2x64xf32>
    %71 = math.tanh %70 : vector<2x64xf32>
    %72 = vector.extract_strided_slice %69 {offsets = [0, 0], sizes = [2, 64], strides = [1, 1]} : vector<2x192xf32> to vector<2x64xf32>
    %73 = vector.extract_strided_slice %69 {offsets = [0, 64], sizes = [2, 64], strides = [1, 1]} : vector<2x192xf32> to vector<2x64xf32>
    %74 = vector.extract_strided_slice %69 {offsets = [0, 128], sizes = [2, 64], strides = [1, 1]} : vector<2x192xf32> to vector<2x64xf32>
    %75 = arith.mulf %73, %58 : vector<2x64xf32>
    %76 = arith.mulf %72, %71 : vector<2x64xf32>
    %77 = arith.addf %75, %76 : vector<2x64xf32>
    %78 = math.tanh %77 : vector<2x64xf32>
    %79 = arith.mulf %74, %78 : vector<2x64xf32>
    %cst_24 = arith.constant dense<0.000000e+00> : vector<2x256xf32>
    %80 = tpu.matmul %79, %6, %cst_24 {dimension_numbers = #tpu.dot_dimension_numbers<[1], [0], [0], [1], [0, 0, 1, 1], [], []>} : vector<2x64xf32>, vector<64x256xf32>, vector<2x256xf32> -> vector<2x256xf32>
    %81 = vector.extract_strided_slice %5 {offsets = [6, 0], sizes = [2, 256], strides = [1, 1]} : vector<18x256xf32> to vector<2x256xf32>
    %82 = arith.addf %80, %81 : vector<2x256xf32>
    %83 = vector.extract_strided_slice %82 {offsets = [0, 0], sizes = [2, 192], strides = [1, 1]} : vector<2x256xf32> to vector<2x192xf32>
    %84 = arith.negf %83 : vector<2x192xf32>
    %85 = math.exp %84 : vector<2x192xf32>
    %cst_25 = arith.constant 1.000000e+00 : f32
    %86 = vector.broadcast %cst_25 : f32 to vector<2x192xf32>
    %87 = arith.addf %86, %85 : vector<2x192xf32>
    %88 = arith.divf %86, %87 : vector<2x192xf32>
    %89 = vector.extract_strided_slice %82 {offsets = [0, 192], sizes = [2, 64], strides = [1, 1]} : vector<2x256xf32> to vector<2x64xf32>
    %90 = math.tanh %89 : vector<2x64xf32>
    %91 = vector.extract_strided_slice %88 {offsets = [0, 0], sizes = [2, 64], strides = [1, 1]} : vector<2x192xf32> to vector<2x64xf32>
    %92 = vector.extract_strided_slice %88 {offsets = [0, 64], sizes = [2, 64], strides = [1, 1]} : vector<2x192xf32> to vector<2x64xf32>
    %93 = vector.extract_strided_slice %88 {offsets = [0, 128], sizes = [2, 64], strides = [1, 1]} : vector<2x192xf32> to vector<2x64xf32>
    %94 = arith.mulf %92, %77 : vector<2x64xf32>
    %95 = arith.mulf %91, %90 : vector<2x64xf32>
    %96 = arith.addf %94, %95 : vector<2x64xf32>
    %97 = math.tanh %96 : vector<2x64xf32>
    %98 = arith.mulf %93, %97 : vector<2x64xf32>
    %cst_26 = arith.constant dense<0.000000e+00> : vector<2x256xf32>
    %99 = tpu.matmul %98, %6, %cst_26 {dimension_numbers = #tpu.dot_dimension_numbers<[1], [0], [0], [1], [0, 0, 1, 1], [], []>} : vector<2x64xf32>, vector<64x256xf32>, vector<2x256xf32> -> vector<2x256xf32>
    %100 = vector.extract_strided_slice %5 {offsets = [8, 0], sizes = [2, 256], strides = [1, 1]} : vector<18x256xf32> to vector<2x256xf32>
    %101 = arith.addf %99, %100 : vector<2x256xf32>
    %102 = vector.extract_strided_slice %101 {offsets = [0, 0], sizes = [2, 192], strides = [1, 1]} : vector<2x256xf32> to vector<2x192xf32>
    %103 = arith.negf %102 : vector<2x192xf32>
    %104 = math.exp %103 : vector<2x192xf32>
    %cst_27 = arith.constant 1.000000e+00 : f32
    %105 = vector.broadcast %cst_27 : f32 to vector<2x192xf32>
    %106 = arith.addf %105, %104 : vector<2x192xf32>
    %107 = arith.divf %105, %106 : vector<2x192xf32>
    %108 = vector.extract_strided_slice %101 {offsets = [0, 192], sizes = [2, 64], strides = [1, 1]} : vector<2x256xf32> to vector<2x64xf32>
    %109 = math.tanh %108 : vector<2x64xf32>
    %110 = vector.extract_strided_slice %107 {offsets = [0, 0], sizes = [2, 64], strides = [1, 1]} : vector<2x192xf32> to vector<2x64xf32>
    %111 = vector.extract_strided_slice %107 {offsets = [0, 64], sizes = [2, 64], strides = [1, 1]} : vector<2x192xf32> to vector<2x64xf32>
    %112 = vector.extract_strided_slice %107 {offsets = [0, 128], sizes = [2, 64], strides = [1, 1]} : vector<2x192xf32> to vector<2x64xf32>
    %113 = arith.mulf %111, %96 : vector<2x64xf32>
    %114 = arith.mulf %110, %109 : vector<2x64xf32>
    %115 = arith.addf %113, %114 : vector<2x64xf32>
    %116 = math.tanh %115 : vector<2x64xf32>
    %117 = arith.mulf %112, %116 : vector<2x64xf32>
    %cst_28 = arith.constant dense<0.000000e+00> : vector<2x256xf32>
    %118 = tpu.matmul %117, %6, %cst_28 {dimension_numbers = #tpu.dot_dimension_numbers<[1], [0], [0], [1], [0, 0, 1, 1], [], []>} : vector<2x64xf32>, vector<64x256xf32>, vector<2x256xf32> -> vector<2x256xf32>
    %119 = vector.extract_strided_slice %5 {offsets = [10, 0], sizes = [2, 256], strides = [1, 1]} : vector<18x256xf32> to vector<2x256xf32>
    %120 = arith.addf %118, %119 : vector<2x256xf32>
    %121 = vector.extract_strided_slice %120 {offsets = [0, 0], sizes = [2, 192], strides = [1, 1]} : vector<2x256xf32> to vector<2x192xf32>
    %122 = arith.negf %121 : vector<2x192xf32>
    %123 = math.exp %122 : vector<2x192xf32>
    %cst_29 = arith.constant 1.000000e+00 : f32
    %124 = vector.broadcast %cst_29 : f32 to vector<2x192xf32>
    %125 = arith.addf %124, %123 : vector<2x192xf32>
    %126 = arith.divf %124, %125 : vector<2x192xf32>
    %127 = vector.extract_strided_slice %120 {offsets = [0, 192], sizes = [2, 64], strides = [1, 1]} : vector<2x256xf32> to vector<2x64xf32>
    %128 = math.tanh %127 : vector<2x64xf32>
    %129 = vector.extract_strided_slice %126 {offsets = [0, 0], sizes = [2, 64], strides = [1, 1]} : vector<2x192xf32> to vector<2x64xf32>
    %130 = vector.extract_strided_slice %126 {offsets = [0, 64], sizes = [2, 64], strides = [1, 1]} : vector<2x192xf32> to vector<2x64xf32>
    %131 = vector.extract_strided_slice %126 {offsets = [0, 128], sizes = [2, 64], strides = [1, 1]} : vector<2x192xf32> to vector<2x64xf32>
    %132 = arith.mulf %130, %115 : vector<2x64xf32>
    %133 = arith.mulf %129, %128 : vector<2x64xf32>
    %134 = arith.addf %132, %133 : vector<2x64xf32>
    %135 = math.tanh %134 : vector<2x64xf32>
    %136 = arith.mulf %131, %135 : vector<2x64xf32>
    %cst_30 = arith.constant dense<0.000000e+00> : vector<2x256xf32>
    %137 = tpu.matmul %136, %6, %cst_30 {dimension_numbers = #tpu.dot_dimension_numbers<[1], [0], [0], [1], [0, 0, 1, 1], [], []>} : vector<2x64xf32>, vector<64x256xf32>, vector<2x256xf32> -> vector<2x256xf32>
    %138 = vector.extract_strided_slice %5 {offsets = [12, 0], sizes = [2, 256], strides = [1, 1]} : vector<18x256xf32> to vector<2x256xf32>
    %139 = arith.addf %137, %138 : vector<2x256xf32>
    %140 = vector.extract_strided_slice %139 {offsets = [0, 0], sizes = [2, 192], strides = [1, 1]} : vector<2x256xf32> to vector<2x192xf32>
    %141 = arith.negf %140 : vector<2x192xf32>
    %142 = math.exp %141 : vector<2x192xf32>
    %cst_31 = arith.constant 1.000000e+00 : f32
    %143 = vector.broadcast %cst_31 : f32 to vector<2x192xf32>
    %144 = arith.addf %143, %142 : vector<2x192xf32>
    %145 = arith.divf %143, %144 : vector<2x192xf32>
    %146 = vector.extract_strided_slice %139 {offsets = [0, 192], sizes = [2, 64], strides = [1, 1]} : vector<2x256xf32> to vector<2x64xf32>
    %147 = math.tanh %146 : vector<2x64xf32>
    %148 = vector.extract_strided_slice %145 {offsets = [0, 0], sizes = [2, 64], strides = [1, 1]} : vector<2x192xf32> to vector<2x64xf32>
    %149 = vector.extract_strided_slice %145 {offsets = [0, 64], sizes = [2, 64], strides = [1, 1]} : vector<2x192xf32> to vector<2x64xf32>
    %150 = vector.extract_strided_slice %145 {offsets = [0, 128], sizes = [2, 64], strides = [1, 1]} : vector<2x192xf32> to vector<2x64xf32>
    %151 = arith.mulf %149, %134 : vector<2x64xf32>
    %152 = arith.mulf %148, %147 : vector<2x64xf32>
    %153 = arith.addf %151, %152 : vector<2x64xf32>
    %154 = math.tanh %153 : vector<2x64xf32>
    %155 = arith.mulf %150, %154 : vector<2x64xf32>
    %cst_32 = arith.constant dense<0.000000e+00> : vector<2x256xf32>
    %156 = tpu.matmul %155, %6, %cst_32 {dimension_numbers = #tpu.dot_dimension_numbers<[1], [0], [0], [1], [0, 0, 1, 1], [], []>} : vector<2x64xf32>, vector<64x256xf32>, vector<2x256xf32> -> vector<2x256xf32>
    %157 = vector.extract_strided_slice %5 {offsets = [14, 0], sizes = [2, 256], strides = [1, 1]} : vector<18x256xf32> to vector<2x256xf32>
    %158 = arith.addf %156, %157 : vector<2x256xf32>
    %159 = vector.extract_strided_slice %158 {offsets = [0, 0], sizes = [2, 192], strides = [1, 1]} : vector<2x256xf32> to vector<2x192xf32>
    %160 = arith.negf %159 : vector<2x192xf32>
    %161 = math.exp %160 : vector<2x192xf32>
    %cst_33 = arith.constant 1.000000e+00 : f32
    %162 = vector.broadcast %cst_33 : f32 to vector<2x192xf32>
    %163 = arith.addf %162, %161 : vector<2x192xf32>
    %164 = arith.divf %162, %163 : vector<2x192xf32>
    %165 = vector.extract_strided_slice %158 {offsets = [0, 192], sizes = [2, 64], strides = [1, 1]} : vector<2x256xf32> to vector<2x64xf32>
    %166 = math.tanh %165 : vector<2x64xf32>
    %167 = vector.extract_strided_slice %164 {offsets = [0, 0], sizes = [2, 64], strides = [1, 1]} : vector<2x192xf32> to vector<2x64xf32>
    %168 = vector.extract_strided_slice %164 {offsets = [0, 64], sizes = [2, 64], strides = [1, 1]} : vector<2x192xf32> to vector<2x64xf32>
    %169 = vector.extract_strided_slice %164 {offsets = [0, 128], sizes = [2, 64], strides = [1, 1]} : vector<2x192xf32> to vector<2x64xf32>
    %170 = arith.mulf %168, %153 : vector<2x64xf32>
    %171 = arith.mulf %167, %166 : vector<2x64xf32>
    %172 = arith.addf %170, %171 : vector<2x64xf32>
    %173 = math.tanh %172 : vector<2x64xf32>
    %174 = arith.mulf %169, %173 : vector<2x64xf32>
    %cst_34 = arith.constant dense<0.000000e+00> : vector<2x256xf32>
    %175 = tpu.matmul %174, %6, %cst_34 {dimension_numbers = #tpu.dot_dimension_numbers<[1], [0], [0], [1], [0, 0, 1, 1], [], []>} : vector<2x64xf32>, vector<64x256xf32>, vector<2x256xf32> -> vector<2x256xf32>
    %176 = vector.extract_strided_slice %5 {offsets = [16, 0], sizes = [2, 256], strides = [1, 1]} : vector<18x256xf32> to vector<2x256xf32>
    %177 = arith.addf %175, %176 : vector<2x256xf32>
    %178 = vector.extract_strided_slice %177 {offsets = [0, 0], sizes = [2, 192], strides = [1, 1]} : vector<2x256xf32> to vector<2x192xf32>
    %179 = arith.negf %178 : vector<2x192xf32>
    %180 = math.exp %179 : vector<2x192xf32>
    %cst_35 = arith.constant 1.000000e+00 : f32
    %181 = vector.broadcast %cst_35 : f32 to vector<2x192xf32>
    %182 = arith.addf %181, %180 : vector<2x192xf32>
    %183 = arith.divf %181, %182 : vector<2x192xf32>
    %184 = vector.extract_strided_slice %177 {offsets = [0, 192], sizes = [2, 64], strides = [1, 1]} : vector<2x256xf32> to vector<2x64xf32>
    %185 = math.tanh %184 : vector<2x64xf32>
    %186 = vector.extract_strided_slice %183 {offsets = [0, 0], sizes = [2, 64], strides = [1, 1]} : vector<2x192xf32> to vector<2x64xf32>
    %187 = vector.extract_strided_slice %183 {offsets = [0, 64], sizes = [2, 64], strides = [1, 1]} : vector<2x192xf32> to vector<2x64xf32>
    %188 = vector.extract_strided_slice %183 {offsets = [0, 128], sizes = [2, 64], strides = [1, 1]} : vector<2x192xf32> to vector<2x64xf32>
    %189 = arith.mulf %187, %172 : vector<2x64xf32>
    %190 = arith.mulf %186, %185 : vector<2x64xf32>
    %191 = arith.addf %189, %190 : vector<2x64xf32>
    %192 = math.tanh %191 : vector<2x64xf32>
    %193 = arith.mulf %188, %192 : vector<2x64xf32>
    %194 = vector.extract_strided_slice %193 {offsets = [0, 32], sizes = [2, 32], strides = [1, 1]} : vector<2x64xf32> to vector<2x32xf32>
    %c0_36 = arith.constant 0 : index
    %c0_37 = arith.constant 0 : index
    %195 = vector.load %arg6[%c0_36, %c0_37] : memref<32x128xf32, #tpu.memory_space<vmem>>, vector<32x128xf32>
    %cst_38 = arith.constant dense<0.000000e+00> : vector<2x128xf32>
    %196 = tpu.matmul %194, %195, %cst_38 {dimension_numbers = #tpu.dot_dimension_numbers<[1], [0], [0], [1], [0, 0, 1, 1], [], []>} : vector<2x32xf32>, vector<32x128xf32>, vector<2x128xf32> -> vector<2x128xf32>
    %c0_39 = arith.constant 0 : index
    %c0_40 = arith.constant 0 : index
    %197 = vector.load %arg7[%c0_39, %c0_40] : memref<1x128xf32, #tpu.memory_space<vmem>>, vector<1x128xf32>
    %198 = vector.broadcast %197 : vector<1x128xf32> to vector<2x128xf32>
    %199 = arith.addf %196, %198 : vector<2x128xf32>
    %cst_41 = arith.constant dense<0xFF800000> : vector<2xf32>
    %200 = vector.multi_reduction <maximumf>, %199, %cst_41 [1] : vector<2x128xf32> to vector<2xf32>
    %201 = vector.shape_cast %200 : vector<2xf32> to vector<2x1xf32>
    %202 = vector.broadcast %201 : vector<2x1xf32> to vector<2x128xf32>
    %203 = arith.subf %199, %202 : vector<2x128xf32>
    %204 = math.exp %203 : vector<2x128xf32>
    %cst_42 = arith.constant dense<0.000000e+00> : vector<2xf32>
    %205 = vector.multi_reduction <add>, %204, %cst_42 [1] : vector<2x128xf32> to vector<2xf32>
    %206 = vector.shape_cast %205 : vector<2xf32> to vector<2x1xf32>
    %207 = math.log %206 : vector<2x1xf32>
    %208 = vector.broadcast %207 : vector<2x1xf32> to vector<2x128xf32>
    %209 = arith.subf %203, %208 : vector<2x128xf32>
    %c0_43 = arith.constant 0 : index
    %c0_44 = arith.constant 0 : index
    %210 = vector.load %arg8[%c0_43, %c0_44] : memref<2x128xf32, #tpu.memory_space<vmem>>, vector<2x128xf32>
    tpu.vector_store %arg8[%c0_43, %c0_44], %209 {strides = array<i32>} : memref<2x128xf32, #tpu.memory_space<vmem>>, vector<2x128xf32>,
    return
  }
}

</mosaic_0001>

<bundles_post_ra>
// kernel: classifier_forward.1
= control target key start
LH: loop header
LB: loop body
LE: loop exit
PB: predicated region body
PF: predicated region fallthrough
CT: control target
= control target key end

     0   :  { %13 = vsyncpa [#allocation3], 0  ;;  %s2023_s0 = inlined_call_operand.vmem [shape: f32[18,32], index: 0, kind: input, shape index: {}]   ;;  %s2024_s1 = inlined_call_operand.vmem [shape: f32[2,2,32], index: 1, kind: input, shape index: {}]   ;;  %s2025_s2 = inlined_call_operand.vmem [shape: f32[2,2,32], index: 2, kind: input, shape index: {}]   ;;  %s2026_s3 = inlined_call_operand.hbm [shape: f32[32,256], index: 3, kind: input, shape index: {}]   ;;  %s2027_s4 = inlined_call_operand.hbm [shape: f32[64,256], index: 4, kind: input, shape index: {}]   ;;  %s2028_s5 = inlined_call_operand.vmem [shape: f32[1,256], index: 5, kind: input, shape index: {}]   ;;  %s2029_s6 = inlined_call_operand.vmem [shape: f32[32,128], index: 6, kind: input, shape index: {}]   ;;  %s2030_s7 = inlined_call_operand.vmem [shape: f32[1,128], index: 7, kind: input, shape index: {}]   ;;  %s2031_s8 = inlined_call_operand.hbm [shape: f32[2,128], index: 8, kind: output, shape index: {}]  }
   0x1   :  { %14 = vsyncpa [#allocation6], 0 }
   0x2   :  { %15 = vsyncpa [#allocation4], 0  ;;  %s1708_s27 = smov [#allocation2]   ;;  %s1636_s9 = scalar_lea.hbm %s2026_s3, 1024 }
   0x3   :  { %s27_s28 = sshll.u32 %s1708_s27, 4  ;;  %p1637_p0 = scmp.ne.s32.totalorder %s2026_s3, %s1636_s9  ;;  %s28_s28 = int_to_ptr.vmem [resolvable:$true] %s27_s28 }
   0x4   :  { %p1640_p1 = scmp.lt.u32.totalorder %s1636_s9, %s2026_s3 }
   0x6   :  { %p1642_p2 = pnand %p1640_p1, %p1637_p0 }
   0x8   :  { %1645 = shalt.err (!%p1642_p2)
}
   0x9   :  { %s1646_s14 = scalar_lea.vmem %s28_s28, 1024  ;;  %p1651_p4 = scmp.lt.s32.totalorder %s28_s28, %s28_s28 }
   0xa   :  { %p1647_p3 = scmp.ne.s32.totalorder %s28_s28, %s1646_s14  ;;  %p1652_p5 = scmp.lt.s32.totalorder %s1646_s14, %s1646_s14 }
   0xc   :  { %p1653_p6 = por %p1652_p5, %p1651_p4 }
   0xe   :  { %p1654_p7 = pnand %p1653_p6, %p1647_p3 }
  0x10   :  { %1657 = shalt.err (!%p1654_p7)
}
  0x11   :  { %s1709_s15 = smov 256   ;;  %s1710_s16 = smov 16  }
  0x12   :  { %33 = dma.hbm_to_vmem [thread:$0]  %s2026_s3, 1024, %s28_s28, [#allocation3], %s1709_s15, %s1709_s15, %s1710_s16  }
  0x13   :  { %s1711_s19 = smov [#allocation5]   ;;  %s1658_s23 = scalar_lea.hbm %s2027_s4, 2048 }
  0x14   :  { %s39_s20 = sshll.u32 %s1711_s19, 4  ;;  %p1659_p8 = scmp.ne.s32.totalorder %s2027_s4, %s1658_s23  ;;  %s40_s20 = int_to_ptr.vmem [resolvable:$true] %s39_s20 }
  0x15   :  { %p1662_p9 = scmp.lt.u32.totalorder %s1658_s23, %s2027_s4 }
  0x17   :  { %p1664_p10 = pnand %p1662_p9, %p1659_p8 }
  0x19   :  { %1667 = shalt.err (!%p1664_p10)
}
  0x1a   :  { %s1668_s29 = scalar_lea.vmem %s40_s20, 2048  ;;  %p1673_p12 = scmp.lt.s32.totalorder %s40_s20, %s40_s20 }
  0x1b   :  { %p1669_p11 = scmp.ne.s32.totalorder %s40_s20, %s1668_s29  ;;  %p1674_p13 = scmp.lt.s32.totalorder %s1668_s29, %s1668_s29 }
  0x1d   :  { %p1675_p0 = por %p1674_p13, %p1673_p12 }
  0x1f   :  { %p1676_p1 = pnand %p1675_p0, %p1669_p11 }
  0x21   :  { %1679 = shalt.err (!%p1676_p1)
}
  0x22   :  { %45 = dma.hbm_to_vmem [thread:$0]  %s2027_s4, 2048, %s40_s20, [#allocation6], %s1709_s15, %s1709_s15, %s1710_s16  }
  0x23   :  { %1702 = dma.done.wait [#allocation3], 1024  }
  0x24   :  { %1703 = vsyncadd [#allocation3], 4294966272 }
  0x25   :  { %1704 = dma.done.wait [#allocation6], 2048  }
  0x26   :  { %1705 = vsyncadd [#allocation6], 4294965248  ;;  %v1712_v0 = vmov 0.0   ;;  %v1304_v1 = vld [vmem:[%s2024_s1 + $0x2] sm:$0x3]  ;;  %v62_v2 = vld [vmem:[#allocation2 + $0x8] sm:$0xff]  ;;  %v71_v45 = vlaneseq }
  0x27   :  { %155 = vmatprep.mubr.f32.mxu1 %v1712_v0  ;;  %394 = vmatprep.mubr.f32.mxu0 %v1712_v0  ;;  %v64_v3 = vld [vmem:[#allocation2 + $0x18] sm:$0xff]  ;;  %s1713_s10 = smov 32   ;;  %v61_v5 = vld [vmem:[#allocation2] sm:$0xff]  ;;  %v63_v6 = vld [vmem:[#allocation2 + $0x10] sm:$0xff]  ;;  %vm81_vm0 = vcmask 261120   ;;  %vm206_vm1 = vcmask 523264  }
  0x28   :  { %194 = vrot.lane.b32.xlu0 %v1304_v1, %s1713_s10  ;;  %v1351_v4 = vpack.c.bf16 %v64_v3, %v62_v2  ;;  %v66_v7 = vld [vmem:[#allocation2 + $0x28] sm:$0xff]  ;;  %v1353_v8 = vpack.c.bf16 %v63_v6, %v61_v5  ;;  %v68_v9 = vld [vmem:[#allocation2 + $0x38] sm:$0xff]  ;;  %v65_v10 = vld [vmem:[#allocation2 + $0x20] sm:$0xff]  ;;  %v72_v46 = vshrl.u32 %v71_v45, 7  ;;  %s1714_s21 = smov 64   ;;  %vm1716_vm2 = vmmov 0  }
  0x29   :  { %v67_v11 = vld [vmem:[#allocation2 + $0x30] sm:$0xff]  ;;  %v1355_v12 = vpack.c.bf16 %v68_v9, %v66_v7  ;;  %v175_v13 = vld [vmem:[#allocation5 + $0x8] sm:$0xff]  ;;  %v177_v14 = vld [vmem:[#allocation5 + $0x18] sm:$0xff]  ;;  %s1717_s3 = smov 96   ;;  %vm1271_vm3 = vcmask 1041408   ;;  %s1718_s30 = smov [#allocation7]  }
  0x2a   :  { %1352 = vmatprep.subr.bf16.mxu1 %v1351_v4  ;;  %v1357_v15 = vpack.c.bf16 %v67_v11, %v65_v10  ;;  %v1794_v16 = vpack.c.bf16 %v177_v14, %v175_v13  ;;  %v174_v17 = vld [vmem:[#allocation5] sm:$0xff]  ;;  %v176_v18 = vld [vmem:[#allocation5 + $0x10] sm:$0xff]  ;;  %v179_v19 = vld [vmem:[#allocation5 + $0x28] sm:$0xff]  ;;  %v73_v47 = vsub.s32 0, %v72_v46  ;;  %v77_v50 = vsub.s32 1, %v72_v46  ;;  %s1291_s9 = sshll.u32 %s1718_s30, 4  ;;  %s1292_s9 = int_to_ptr.vmem [resolvable:$true] %s1291_s9 }
  0x2b   :  { %1354 = vmatpush1.bf16.msra.mxu1 %v1353_v8  ;;  %v1796_v20 = vpack.c.bf16 %v176_v18, %v174_v17  ;;  %v181_v21 = vld [vmem:[#allocation5 + $0x38] sm:$0xff]  ;;  %v178_v23 = vld [vmem:[#allocation5 + $0x20] sm:$0xff]  ;;  %v180_v24 = vld [vmem:[#allocation5 + $0x30] sm:$0xff]  ;;  %p1685_p3 = scmp.lt.s32.totalorder %s1292_s9, %s1292_s9 }
  0x2c   :  { %1356 = vmatprep.subr.bf16.mxu1 %v1355_v12  ;;  %v1798_v22 = vpack.c.bf16 %v181_v21, %v179_v19  ;;  %1376 = vmatprep.subr.bf16.mxu0 %v1794_v16  ;;  %v58_v25 = vld [vmem:[%s2023_s0] sm:$0xff]  ;;  %v183_v26 = vld [vmem:[#allocation5 + $0x48] sm:$0xff]  ;;  %v185_v27 = vld [vmem:[#allocation5 + $0x58] sm:$0xff]  ;;  %v1807_v28 = vpack.c.bf16 %v180_v24, %v178_v23 }
  0x2d   :  { %1378 = vmatpush1.bf16.msra.mxu0 %v1796_v20  ;;  %v1305_v29 = vld [vmem:[%s2025_s2 + $0x2] sm:$0x3]  ;;  %v184_v31 = vld [vmem:[#allocation5 + $0x50] sm:$0xff]  ;;  %v1814_v32 = vpack.c.bf16 %v185_v27, %v183_v26  ;;  %v59_v33 = vld [vmem:[%s2023_s0 + $0x8] sm:$0xff] }
  0x2e   :  { %1380 = vmatprep.subr.bf16.mxu0 %v1798_v22  ;;  %v182_v30 = vld [vmem:[#allocation5 + $0x40] sm:$0xff]  ;;  %202 = vrot.lane.b32.xlu0 %v1305_v29, %s1713_s10  ;;  %v187_v34 = vld [vmem:[#allocation5 + $0x68] sm:$0xff]  ;;  %v189_v35 = vld [vmem:[#allocation5 + $0x78] sm:$0xff] }
  0x2f   :  { %1358 = vmatpush1.bf16.msra.mxu1 %v1357_v15  ;;  %v1823_v36 = vpack.c.bf16 %v184_v31, %v182_v30  ;;  %v186_v37 = vld [vmem:[#allocation5 + $0x60] sm:$0xff]  ;;  %v188_v38 = vld [vmem:[#allocation5 + $0x70] sm:$0xff]  ;;  %v1827_v39 = vpack.c.bf16 %v189_v35, %v187_v34 }
  0x30   :  { %1360 = vmatprep.subr.bf16.mxu1 %v1794_v16  ;;  %v60_v40 = vld [vmem:[%s2023_s0 + $0x10] sm:$0x3]  ;;  %v1836_v41 = vpack.c.bf16 %v188_v38, %v186_v37  ;;  %v190_v42 = vld [vmem:[%s2024_s1] sm:$0x3] }
  0x31   :  { %1382 = vmatpush1.bf16.msra.mxu0 %v1807_v28  ;;  %v69_v48 = vld [vmem:[%s2028_s5] sm:$0x3] }
  0x32   :  { %1301 = vmatmul.mubr.msk.f32.vlgmr.msra.gmra.mrb[0].mxu1 %vm81_vm0, %v58_v25  ;;  %1384 = vmatprep.subr.bf16.mxu0 %v1814_v32  ;;  %v74_v52 = vrot.slane %v69_v48, %v73_v47  ;;  %v78_v53 = vrot.slane %v69_v48, %v77_v50  ;;  %v198_v4 = vld [vmem:[%s2025_s2] sm:$0x3] }
  0x33   :  { %1362 = vmatpush1.bf16.msra.mxu1 %v1796_v20  ;;  %161 = vmatprep.mubr.f32.mxu1 %v1712_v0 }
  0x34   :  { %1364 = vmatprep.subr.bf16.mxu1 %v1798_v22 }
  0x35   :  { %1386 = vmatpush1.bf16.msra.mxu0 %v1823_v36 }
  0x36   :  { %1302 = vmatmul.mubr.msk.f32.gmra.mrb[2].mxu1 %vm81_vm0, %v59_v33  ;;  %1388 = vmatprep.subr.bf16.mxu0 %v1827_v39 }
  0x37   :  { %1366 = vmatpush1.bf16.msra.mxu1 %v1807_v28  ;;  %167 = vmatprep.mubr.f32.mxu1 %v1712_v0 }
  0x38   :  { %1368 = vmatprep.subr.bf16.mxu1 %v1814_v32 }
  0x39   :  { %1390 = vmatpush1.bf16.msra.mxu0 %v1836_v41 }
  0x3a   :  { %1303 = vmatmul.mubr.msk.f32.gmra.mrb[4].mxu1 %vm81_vm0, %v60_v40  ;;  %1408 = vmatprep.subr.bf16.mxu0 %v1794_v16 }
  0x3b   :  { %1370 = vmatpush1.bf16.msra.mxu1 %v1823_v36  ;;  %274 = vmatprep.mubr.f32.mxu1 %v1712_v0 }
  0x3c   :  { %1372 = vmatprep.subr.bf16.mxu1 %v1827_v39 }
  0x3f   :  { %1374 = vmatpush1.bf16.msra.mxu1 %v1836_v41 }
  0x40   :  { %1392 = vmatprep.subr.bf16.mxu1 %v1794_v16 }
  0x9a   :  { %v195_v43 = vpop.permute.xlu0 %194 }
  0x9b   :  { %v1851_v44 = vsel %vm81_vm0, %v190_v42, %v195_v43 }
  0x9c   :  { %1306 = vmatmul.mubr.msk.f32.vlgmr.msra.gmra.mrb[6].mxu1 %vm206_vm1, %v1851_v44 }
  0x9d   :  { %1394 = vmatpush1.bf16.msra.mxu1 %v1796_v20  ;;  %506 = vmatprep.mubr.f32.mxu1 %v1712_v0 }
  0x9e   :  { %1396 = vmatprep.subr.bf16.mxu1 %v1798_v22 }
  0xa0   :  { %v203_v3 = vpop.permute.xlu0 %202 }
  0xa1   :  { %1398 = vmatpush1.bf16.msra.mxu1 %v1807_v28  ;;  %v205_v6 = vsel %vm81_vm0, %v198_v4, %v203_v3 }
  0xa2   :  { %1400 = vmatprep.subr.bf16.mxu1 %v1814_v32 }
  0xa5   :  { %1402 = vmatpush1.bf16.msra.mxu1 %v1823_v36 }
  0xa6   :  { %1404 = vmatprep.subr.bf16.mxu1 %v1827_v39 }
  0xa9   :  { %1406 = vmatpush1.bf16.msra.mxu1 %v1836_v41 }
  0xaa   :  { %1424 = vmatprep.subr.bf16.mxu1 %v1794_v16 }
 0x105   :  { %v157_v49 = vpop.f32.mrb[0].mxu1 }
 0x106   :  { %v159_v51 = vpop.f32.mrb[1].mxu1  ;;  %v1884_v7 = vadd.f32 %v157_v49, %v74_v52 }
 0x107   :  { %v1875_v62 = vadd.f32 %v159_v51, %v78_v53 }
 0x108   :  { %v323_v42 = vrot.slane %v1884_v7, 2 }
 0x109   :  { %v163_v54 = vpop.f32.mrb[2].mxu1  ;;  %v324_v35 = vrot.slane %v1875_v62, 2  ;;  %v436_v4 = vrot.slane %v1875_v62, 4 }
 0x10a   :  { %v1867_v55 = vadd.f32 %v163_v54, %v74_v52  ;;  %v165_v56 = vpop.f32.mrb[3].mxu1 }
 0x10b   :  { %v1869_v57 = vadd.f32 %v165_v56, %v78_v53 }
 0x10d   :  { %v169_v58 = vpop.f32.mrb[4].mxu1 }
 0x10e   :  { %v1871_v59 = vadd.f32 %v169_v58, %v74_v52  ;;  %v171_v60 = vpop.f32.mrb[5].mxu1 }
 0x10f   :  { %v1873_v61 = vadd.f32 %v171_v60, %v78_v53 }
 0x16f   :  { %v276_v63 = vpop.f32.mrb[6].mxu1 }
 0x170   :  { %v278_v1 = vpop.f32.mrb[7].mxu1  ;;  %v277_v8 = vadd.f32 %v276_v63, %v1884_v7 }
 0x171   :  { %v279_v2 = vadd.f32 %v278_v1, %v1875_v62 }
 0x172   :  { %v1307_v9 = vmul.f32 -1.442695, %v277_v8 }
 0x173   :  { %1524 = vtanh.f32 %v279_v2  ;;  %v1308_v23 = vmul.f32 -1.442695, %v279_v2 }
 0x174   :  { %1526 = vpow2.f32 %v1307_v9  ;;  %v435_v9 = vrot.slane %v1884_v7, 4 }
 0x17d   :  { %v1525_v5 = vpop.eup %1524 }
 0x17e   :  { %300 = vrot.lane.b32.xlu1 %v1525_v5, %s1714_s21  ;;  %v1527_v10 = vpop.eup %1526 }
 0x17f   :  { %v287_v11 = vadd.f32 1.0, %v1527_v10 }
 0x181   :  { %1528 = vrcp.f32 %v287_v11 }
 0x182   :  { %295 = vrot.lane.b32.xlu1 %v205_v6, %s1714_s21 }
 0x18b   :  { %v1529_v12 = vpop.eup %1528 }
 0x1f0   :  { %v301_v13 = vpop.permute.xlu1 %300 }
 0x1f1   :  { %v303_v14 = vmul.f32 %v1529_v12, %v301_v13 }
 0x1f3   :  { %305 = vrot.lane.b32.xlu0 %v303_v14, %s1714_s21 }
 0x1f4   :  { %v296_v15 = vpop.permute.xlu1 %295 }
 0x1f5   :  { %v298_v17 = vmul.f32 %v1529_v12, %v296_v15 }
 0x265   :  { %v306_v18 = vpop.permute.xlu0 %305 }
 0x266   :  { %v308_v19 = vadd.f32 %v306_v18, %v298_v17 }
 0x268   :  { %1530 = vtanh.f32 %v308_v19  ;;  %317 = vrot.lane.b32.xlu0 %v308_v19, %s1714_s21 }
 0x269   :  { %1532 = vpow2.f32 %v1308_v23 }
 0x272   :  { %v1531_v21 = vpop.eup %1530 }
 0x273   :  { %311 = vrot.lane.b32.xlu1 %v1531_v21, %s1714_s21  ;;  %v1533_v24 = vpop.eup %1532 }
 0x274   :  { %v288_v25 = vadd.f32 1.0, %v1533_v24 }
 0x276   :  { %1534 = vrcp.f32 %v288_v25 }
 0x280   :  { %v1535_v29 = vpop.eup %1534 }
 0x2da   :  { %v318_v26 = vpop.permute.xlu0 %317 }
 0x2db   :  { %v320_v27 = vsel %vm81_vm0, %v318_v26, %v205_v6 }
 0x2dc   :  { %415 = vrot.lane.b32.xlu0 %v320_v27, %s1714_s21 }
 0x2e5   :  { %v312_v30 = vpop.permute.xlu1 %311 }
 0x2e6   :  { %v314_v31 = vmul.f32 %v1535_v29, %v312_v30 }
 0x2e8   :  { %v315_v33 = vsel %vm81_vm0, %v314_v31, %v1851_v44 }
 0x2e9   :  { %1309 = vmatmul.mubr.msk.f32.vlgmr.msra.gmra.mrb[0].mxu0 %vm206_vm1, %v315_v33  ;;  %v544_v33 = vrot.slane %v1875_v62, 6 }
 0x2ea   :  { %1410 = vmatpush1.bf16.msra.mxu0 %v1796_v20  ;;  %614 = vmatprep.mubr.f32.mxu0 %v1712_v0 }
 0x2eb   :  { %1412 = vmatprep.subr.bf16.mxu0 %v1798_v22 }
 0x2ee   :  { %1414 = vmatpush1.bf16.msra.mxu0 %v1807_v28 }
 0x2ef   :  { %1416 = vmatprep.subr.bf16.mxu0 %v1814_v32 }
 0x2f2   :  { %1418 = vmatpush1.bf16.msra.mxu0 %v1823_v36 }
 0x2f3   :  { %1420 = vmatprep.subr.bf16.mxu0 %v1827_v39 }
 0x2f6   :  { %1422 = vmatpush1.bf16.msra.mxu0 %v1836_v41 }
 0x2f7   :  { %1440 = vmatprep.subr.bf16.mxu0 %v1794_v16 }
 0x34e   :  { %v416_v50 = vpop.permute.xlu0 %415 }
 0x3bc   :  { %v396_v34 = vpop.f32.mrb[0].mxu0 }
 0x3bd   :  { %v398_v37 = vpop.f32.mrb[1].mxu0  ;;  %v397_v43 = vadd.f32 %v396_v34, %v323_v42 }
 0x3be   :  { %v399_v38 = vadd.f32 %v398_v37, %v324_v35 }
 0x3bf   :  { %v1310_v44 = vmul.f32 -1.442695, %v397_v43 }
 0x3c0   :  { %1536 = vtanh.f32 %v399_v38  ;;  %v1311_v56 = vmul.f32 -1.442695, %v399_v38  ;;  %v543_v38 = vrot.slane %v1884_v7, 6 }
 0x3c1   :  { %1538 = vpow2.f32 %v1310_v44 }
 0x3ca   :  { %v1537_v40 = vpop.eup %1536 }
 0x3cb   :  { %420 = vrot.lane.b32.xlu1 %v1537_v40, %s1714_s21  ;;  %v1539_v45 = vpop.eup %1538 }
 0x3cc   :  { %v407_v46 = vadd.f32 1.0, %v1539_v45 }
 0x3ce   :  { %1540 = vrcp.f32 %v407_v46 }
 0x3d8   :  { %v1541_v47 = vpop.eup %1540 }
 0x3d9   :  { %v418_v51 = vmul.f32 %v1541_v47, %v416_v50 }
 0x43d   :  { %v421_v48 = vpop.permute.xlu1 %420 }
 0x43e   :  { %v423_v49 = vmul.f32 %v1541_v47, %v421_v48 }
 0x440   :  { %425 = vrot.lane.b32.xlu1 %v423_v49, %s1714_s21 }
 0x4b2   :  { %v426_v52 = vpop.permute.xlu1 %425 }
 0x4b3   :  { %v428_v53 = vadd.f32 %v426_v52, %v418_v51 }
 0x4b5   :  { %1542 = vtanh.f32 %v428_v53 }
 0x4b6   :  { %1544 = vpow2.f32 %v1311_v56 }
 0x4bf   :  { %v1543_v54 = vpop.eup %1542 }
 0x4c0   :  { %431 = vrot.lane.b32.xlu0 %v1543_v54, %s1714_s21  ;;  %v1545_v58 = vpop.eup %1544 }
 0x4c1   :  { %v408_v60 = vadd.f32 1.0, %v1545_v58 }
 0x4c3   :  { %1546 = vrcp.f32 %v408_v60 }
 0x4cd   :  { %v1547_v63 = vpop.eup %1546 }
 0x532   :  { %v432_v1 = vpop.permute.xlu0 %431 }
 0x533   :  { %v434_v2 = vmul.f32 %v1547_v63, %v432_v1 }
 0x535   :  { %1312 = vmatmul.mubr.msk.f32.vlgmr.msra.gmra.mrb[8].mxu1 %vm206_vm1, %v434_v2 }
 0x536   :  { %1426 = vmatpush1.bf16.msra.mxu1 %v1796_v20  ;;  %718 = vmatprep.mubr.f32.mxu1 %v1712_v0 }
 0x537   :  { %1428 = vmatprep.subr.bf16.mxu1 %v1798_v22 }
 0x53a   :  { %1430 = vmatpush1.bf16.msra.mxu1 %v1807_v28 }
 0x53b   :  { %1432 = vmatprep.subr.bf16.mxu1 %v1814_v32 }
 0x53e   :  { %1434 = vmatpush1.bf16.msra.mxu1 %v1823_v36 }
 0x53f   :  { %1436 = vmatprep.subr.bf16.mxu1 %v1827_v39 }
 0x542   :  { %1438 = vmatpush1.bf16.msra.mxu1 %v1836_v41 }
 0x543   :  { %1456 = vmatprep.subr.bf16.mxu1 %v1794_v16 }
 0x608   :  { %v508_v3 = vpop.f32.mrb[8].mxu1 }
 0x609   :  { %v510_v5 = vpop.f32.mrb[9].mxu1  ;;  %v509_v10 = vadd.f32 %v508_v3, %v435_v9 }
 0x60a   :  { %v511_v6 = vadd.f32 %v510_v5, %v436_v4 }
 0x60b   :  { %v1313_v11 = vmul.f32 -1.442695, %v509_v10 }
 0x60c   :  { %1548 = vtanh.f32 %v511_v6  ;;  %v1314_v24 = vmul.f32 -1.442695, %v511_v6 }
 0x60d   :  { %1550 = vpow2.f32 %v1313_v11 }
 0x616   :  { %v1549_v8 = vpop.eup %1548 }
 0x617   :  { %528 = vrot.lane.b32.xlu1 %v1549_v8, %s1714_s21  ;;  %v1551_v12 = vpop.eup %1550 }
 0x618   :  { %v519_v13 = vadd.f32 1.0, %v1551_v12 }
 0x61a   :  { %1552 = vrcp.f32 %v519_v13 }
 0x624   :  { %v1553_v14 = vpop.eup %1552 }
 0x625   :  { %v526_v18 = vmul.f32 %v1553_v14, %v428_v53 }
 0x689   :  { %v529_v15 = vpop.permute.xlu1 %528 }
 0x68a   :  { %v531_v17 = vmul.f32 %v1553_v14, %v529_v15 }
 0x68c   :  { %533 = vrot.lane.b32.xlu0 %v531_v17, %s1714_s21 }
 0x6fe   :  { %v534_v19 = vpop.permute.xlu0 %533 }
 0x6ff   :  { %v536_v21 = vadd.f32 %v534_v19, %v526_v18 }
 0x701   :  { %1554 = vtanh.f32 %v536_v21 }
 0x702   :  { %1556 = vpow2.f32 %v1314_v24  ;;  %v758_v24 = vrot.slane %v1869_v57, 2 }
 0x70b   :  { %v1555_v23 = vpop.eup %1554 }
 0x70c   :  { %539 = vrot.lane.b32.xlu1 %v1555_v23, %s1714_s21  ;;  %v1557_v25 = vpop.eup %1556 }
 0x70d   :  { %v520_v26 = vadd.f32 1.0, %v1557_v25 }
 0x70f   :  { %1558 = vrcp.f32 %v520_v26 }
 0x719   :  { %v1559_v27 = vpop.eup %1558 }
 0x77e   :  { %v540_v29 = vpop.permute.xlu1 %539 }
 0x77f   :  { %v542_v30 = vmul.f32 %v1559_v27, %v540_v29  ;;  %v757_v29 = vrot.slane %v1867_v55, 2 }
 0x781   :  { %1315 = vmatmul.mubr.msk.f32.vlgmr.msra.gmra.mrb[2].mxu0 %vm206_vm1, %v542_v30 }
 0x782   :  { %1442 = vmatpush1.bf16.msra.mxu0 %v1796_v20  ;;  %828 = vmatprep.mubr.f32.mxu0 %v1712_v0 }
 0x783   :  { %1444 = vmatprep.subr.bf16.mxu0 %v1798_v22 }
 0x786   :  { %1446 = vmatpush1.bf16.msra.mxu0 %v1807_v28 }
 0x787   :  { %1448 = vmatprep.subr.bf16.mxu0 %v1814_v32 }
 0x78a   :  { %1450 = vmatpush1.bf16.msra.mxu0 %v1823_v36 }
 0x78b   :  { %1452 = vmatprep.subr.bf16.mxu0 %v1827_v39 }
 0x78e   :  { %1454 = vmatpush1.bf16.msra.mxu0 %v1836_v41 }
 0x78f   :  { %1472 = vmatprep.subr.bf16.mxu0 %v1794_v16 }
 0x854   :  { %v616_v31 = vpop.f32.mrb[2].mxu0 }
 0x855   :  { %v618_v34 = vpop.f32.mrb[3].mxu0  ;;  %v617_v40 = vadd.f32 %v616_v31, %v543_v38 }
 0x856   :  { %v619_v35 = vadd.f32 %v618_v34, %v544_v33 }
 0x857   :  { %v1316_v42 = vmul.f32 -1.442695, %v617_v40 }
 0x858   :  { %1560 = vtanh.f32 %v619_v35  ;;  %v1317_v51 = vmul.f32 -1.442695, %v619_v35 }
 0x859   :  { %1562 = vpow2.f32 %v1316_v42 }
 0x862   :  { %v1561_v37 = vpop.eup %1560 }
 0x863   :  { %636 = vrot.lane.b32.xlu0 %v1561_v37, %s1714_s21  ;;  %v1563_v43 = vpop.eup %1562 }
 0x864   :  { %v627_v44 = vadd.f32 1.0, %v1563_v43 }
 0x866   :  { %1564 = vrcp.f32 %v627_v44 }
 0x870   :  { %v1565_v45 = vpop.eup %1564 }
 0x871   :  { %v634_v62 = vmul.f32 %v1565_v45, %v536_v21 }
 0x8d5   :  { %v637_v46 = vpop.permute.xlu0 %636 }
 0x8d6   :  { %v639_v47 = vmul.f32 %v1565_v45, %v637_v46 }
 0x8d8   :  { %641 = vrot.lane.b32.xlu1 %v639_v47, %s1714_s21 }
 0x94a   :  { %v642_v48 = vpop.permute.xlu1 %641 }
 0x94b   :  { %v644_v49 = vadd.f32 %v642_v48, %v634_v62 }
 0x94d   :  { %1566 = vtanh.f32 %v644_v49 }
 0x94e   :  { %1568 = vpow2.f32 %v1317_v51 }
 0x957   :  { %v1567_v50 = vpop.eup %1566 }
 0x958   :  { %647 = vrot.lane.b32.xlu0 %v1567_v50, %s1714_s21  ;;  %v1569_v7 = vpop.eup %1568  ;;  %v866_v50 = vrot.slane %v1869_v57, 4 }
 0x959   :  { %v628_v52 = vadd.f32 1.0, %v1569_v7 }
 0x95b   :  { %1570 = vrcp.f32 %v628_v52 }
 0x965   :  { %v1571_v53 = vpop.eup %1570 }
 0x9ca   :  { %v648_v54 = vpop.permute.xlu0 %647 }
 0x9cb   :  { %v650_v56 = vmul.f32 %v1571_v53, %v648_v54  ;;  %v865_v53 = vrot.slane %v1867_v55, 4 }
 0x9cd   :  { %1318 = vmatmul.mubr.msk.f32.vlgmr.msra.gmra.mrb[10].mxu1 %vm206_vm1, %v650_v56 }
 0x9ce   :  { %1458 = vmatpush1.bf16.msra.mxu1 %v1796_v20  ;;  %936 = vmatprep.mubr.f32.mxu1 %v1712_v0 }
 0x9cf   :  { %1460 = vmatprep.subr.bf16.mxu1 %v1798_v22 }
 0x9d2   :  { %1462 = vmatpush1.bf16.msra.mxu1 %v1807_v28 }
 0x9d3   :  { %1464 = vmatprep.subr.bf16.mxu1 %v1814_v32 }
 0x9d6   :  { %1466 = vmatpush1.bf16.msra.mxu1 %v1823_v36 }
 0x9d7   :  { %1468 = vmatprep.subr.bf16.mxu1 %v1827_v39 }
 0x9da   :  { %1470 = vmatpush1.bf16.msra.mxu1 %v1836_v41 }
 0xaa0   :  { %v720_v58 = vpop.f32.mrb[10].mxu1 }
 0xaa1   :  { %v722_v60 = vpop.f32.mrb[11].mxu1  ;;  %v721_v2 = vadd.f32 %v720_v58, %v1867_v55 }
 0xaa2   :  { %v723_v63 = vadd.f32 %v722_v60, %v1869_v57 }
 0xaa3   :  { %v1319_v3 = vmul.f32 -1.442695, %v721_v2 }
 0xaa4   :  { %1572 = vtanh.f32 %v723_v63  ;;  %v1320_v14 = vmul.f32 -1.442695, %v723_v63 }
 0xaa5   :  { %1574 = vpow2.f32 %v1319_v3 }
 0xaae   :  { %v1573_v1 = vpop.eup %1572 }
 0xaaf   :  { %740 = vrot.lane.b32.xlu1 %v1573_v1, %s1714_s21  ;;  %v1575_v4 = vpop.eup %1574 }
 0xab0   :  { %v731_v5 = vadd.f32 1.0, %v1575_v4 }
 0xab2   :  { %1576 = vrcp.f32 %v731_v5 }
 0xabc   :  { %v1577_v6 = vpop.eup %1576 }
 0xabd   :  { %v738_v10 = vmul.f32 %v1577_v6, %v644_v49 }
 0xb21   :  { %v741_v8 = vpop.permute.xlu1 %740 }
 0xb22   :  { %v743_v9 = vmul.f32 %v1577_v6, %v741_v8 }
 0xb24   :  { %745 = vrot.lane.b32.xlu0 %v743_v9, %s1714_s21 }
 0xb96   :  { %v746_v11 = vpop.permute.xlu0 %745 }
 0xb97   :  { %v748_v12 = vadd.f32 %v746_v11, %v738_v10 }
 0xb99   :  { %1578 = vtanh.f32 %v748_v12 }
 0xb9a   :  { %1580 = vpow2.f32 %v1320_v14 }
 0xba3   :  { %v1579_v13 = vpop.eup %1578 }
 0xba4   :  { %751 = vrot.lane.b32.xlu1 %v1579_v13, %s1714_s21  ;;  %v1581_v15 = vpop.eup %1580 }
 0xba5   :  { %v732_v17 = vadd.f32 1.0, %v1581_v15  ;;  %v974_v15 = vrot.slane %v1869_v57, 6 }
 0xba7   :  { %1582 = vrcp.f32 %v732_v17 }
 0xbb1   :  { %v1583_v18 = vpop.eup %1582 }
 0xc16   :  { %v752_v19 = vpop.permute.xlu1 %751 }
 0xc17   :  { %v754_v21 = vmul.f32 %v1583_v18, %v752_v19 }
 0xc19   :  { %1321 = vmatmul.mubr.msk.f32.vlgmr.msra.gmra.mrb[4].mxu0 %vm206_vm1, %v754_v21 }
 0xc1a   :  { %1474 = vmatpush1.bf16.msra.mxu0 %v1796_v20  ;;  %1044 = vmatprep.mubr.f32.mxu0 %v1712_v0 }
 0xc1b   :  { %1476 = vmatprep.subr.bf16.mxu0 %v1798_v22 }
 0xc1e   :  { %1478 = vmatpush1.bf16.msra.mxu0 %v1807_v28 }
 0xc1f   :  { %1480 = vmatprep.subr.bf16.mxu0 %v1814_v32 }
 0xc22   :  { %1482 = vmatpush1.bf16.msra.mxu0 %v1823_v36 }
 0xc23   :  { %1484 = vmatprep.subr.bf16.mxu0 %v1827_v39 }
 0xc26   :  { %1486 = vmatpush1.bf16.msra.mxu0 %v1836_v41 }
 0xc27   :  { %1488 = vmatprep.subr.bf16.mxu0 %v1794_v16 }
 0xcec   :  { %v830_v23 = vpop.f32.mrb[4].mxu0 }
 0xced   :  { %v832_v25 = vpop.f32.mrb[5].mxu0  ;;  %v831_v30 = vadd.f32 %v830_v23, %v757_v29 }
 0xcee   :  { %v833_v26 = vadd.f32 %v832_v25, %v758_v24 }
 0xcef   :  { %v1322_v31 = vmul.f32 -1.442695, %v831_v30 }
 0xcf0   :  { %1584 = vtanh.f32 %v833_v26  ;;  %v1323_v44 = vmul.f32 -1.442695, %v833_v26 }
 0xcf1   :  { %1586 = vpow2.f32 %v1322_v31 }
 0xcfa   :  { %v1585_v27 = vpop.eup %1584 }
 0xcfb   :  { %850 = vrot.lane.b32.xlu0 %v1585_v27, %s1714_s21  ;;  %v1587_v33 = vpop.eup %1586 }
 0xcfc   :  { %v841_v34 = vadd.f32 1.0, %v1587_v33 }
 0xcfe   :  { %1588 = vrcp.f32 %v841_v34 }
 0xd08   :  { %v1589_v35 = vpop.eup %1588 }
 0xd09   :  { %v848_v38 = vmul.f32 %v1589_v35, %v748_v12 }
 0xd6d   :  { %v851_v37 = vpop.permute.xlu0 %850 }
 0xd6e   :  { %v853_v16 = vmul.f32 %v1589_v35, %v851_v37 }
 0xd70   :  { %855 = vrot.lane.b32.xlu1 %v853_v16, %s1714_s21 }
 0xde2   :  { %v856_v40 = vpop.permute.xlu1 %855 }
 0xde3   :  { %v858_v42 = vadd.f32 %v856_v40, %v848_v38 }
 0xde5   :  { %1590 = vtanh.f32 %v858_v42 }
 0xde6   :  { %1592 = vpow2.f32 %v1323_v44 }
 0xdef   :  { %v1591_v43 = vpop.eup %1590 }
 0xdf0   :  { %861 = vrot.lane.b32.xlu0 %v1591_v43, %s1714_s21  ;;  %v1593_v45 = vpop.eup %1592 }
 0xdf1   :  { %v842_v46 = vadd.f32 1.0, %v1593_v45 }
 0xdf3   :  { %1594 = vrcp.f32 %v842_v46 }
 0xdfd   :  { %v1595_v47 = vpop.eup %1594 }
 0xe62   :  { %v862_v62 = vpop.permute.xlu0 %861 }
 0xe63   :  { %v864_v48 = vmul.f32 %v1595_v47, %v862_v62  ;;  %v1186_v62 = vld [vmem:[%s2029_s6 + $0x8] sm:$0xff] }
 0xe65   :  { %1324 = vmatmul.mubr.msk.f32.vlgmr.msra.gmra.mrb[12].mxu1 %vm206_vm1, %v864_v48  ;;  %v1187_v48 = vld [vmem:[%s2029_s6 + $0x10] sm:$0xff] }
 0xe66   :  { %1348 = vmatprep.mubr.msk.f32.mxu1 %vm1716_vm2, %v1712_v0 }
 0xf38   :  { %v938_v49 = vpop.f32.mrb[12].mxu1 }
 0xf39   :  { %v940_v51 = vpop.f32.mrb[13].mxu1  ;;  %v939_v54 = vadd.f32 %v938_v49, %v865_v53  ;;  %v1715_v49 = vmov 0.0|0.0  }
 0xf3a   :  { %v941_v7 = vadd.f32 %v940_v51, %v866_v50  ;;  %1503 = vmatprep.subr.bf16.mxu1 %v1715_v49  ;;  %v1188_v51 = vld [vmem:[%s2029_s6 + $0x18] sm:$0xff] }
 0xf3b   :  { %v1325_v56 = vmul.f32 -1.442695, %v939_v54 }
 0xf3c   :  { %1596 = vtanh.f32 %v941_v7  ;;  %v1326_v8 = vmul.f32 -1.442695, %v941_v7  ;;  %v1507_v7 = vpack.c.bf16 %v1188_v51, %v1187_v48 }
 0xf3d   :  { %1598 = vpow2.f32 %v1325_v56 }
 0xf46   :  { %v1597_v52 = vpop.eup %1596 }
 0xf47   :  { %958 = vrot.lane.b32.xlu1 %v1597_v52, %s1714_s21  ;;  %v1599_v58 = vpop.eup %1598 }
 0xf48   :  { %v949_v60 = vadd.f32 1.0, %v1599_v58 }
 0xf4a   :  { %1600 = vrcp.f32 %v949_v60 }
 0xf54   :  { %v1601_v63 = vpop.eup %1600 }
 0xf55   :  { %v956_v3 = vmul.f32 %v1601_v63, %v858_v42 }
 0xfb9   :  { %v959_v1 = vpop.permute.xlu1 %958 }
 0xfba   :  { %v961_v2 = vmul.f32 %v1601_v63, %v959_v1 }
 0xfbc   :  { %963 = vrot.lane.b32.xlu0 %v961_v2, %s1714_s21 }
0x102e   :  { %v964_v4 = vpop.permute.xlu0 %963 }
0x102f   :  { %v966_v5 = vadd.f32 %v964_v4, %v956_v3 }
0x1031   :  { %1602 = vtanh.f32 %v966_v5 }
0x1032   :  { %1604 = vpow2.f32 %v1326_v8 }
0x103b   :  { %v1603_v6 = vpop.eup %1602 }
0x103c   :  { %969 = vrot.lane.b32.xlu1 %v1603_v6, %s1714_s21  ;;  %v1605_v9 = vpop.eup %1604 }
0x103d   :  { %v950_v10 = vadd.f32 1.0, %v1605_v9 }
0x103f   :  { %1606 = vrcp.f32 %v950_v10 }
0x1049   :  { %v1607_v11 = vpop.eup %1606 }
0x10ae   :  { %v970_v12 = vpop.permute.xlu1 %969 }
0x10af   :  { %v972_v13 = vmul.f32 %v1607_v11, %v970_v12 }
0x10b1   :  { %1327 = vmatmul.mubr.msk.f32.vlgmr.msra.gmra.mrb[6].mxu0 %vm206_vm1, %v972_v13 }
0x10b2   :  { %1490 = vmatpush1.bf16.msra.mxu0 %v1796_v20  ;;  %1148 = vmatprep.mubr.f32.mxu0 %v1712_v0  ;;  %v1333_v0 = vld [vmem:[%s2030_s7] ss:$0 sm:$0xff]  ;;  %s1680_s7 = scalar_lea.vmem %s1292_s9, 32 }
0x10b3   :  { %1492 = vmatprep.subr.bf16.mxu0 %v1798_v22  ;;  %v973_v22 = vrot.slane %v1867_v55, 6  ;;  %p1681_p2 = scmp.ne.s32.totalorder %s1292_s9, %s1680_s7  ;;  %p1686_p4 = scmp.lt.s32.totalorder %s1680_s7, %s1680_s7 }
0x10b5   :  { %p1687_p5 = por %p1686_p4, %p1685_p3 }
0x10b6   :  { %1494 = vmatpush1.bf16.msra.mxu0 %v1807_v28 }
0x10b7   :  { %1496 = vmatprep.subr.bf16.mxu0 %v1814_v32  ;;  %p1688_p6 = pnand %p1687_p5, %p1681_p2 }
0x10ba   :  { %1498 = vmatpush1.bf16.msra.mxu0 %v1823_v36 }
0x10bb   :  { %1500 = vmatprep.subr.bf16.mxu0 %v1827_v39 }
0x10be   :  { %1502 = vmatpush1.bf16.msra.mxu0 %v1836_v41 }
0x1184   :  { %v1046_v14 = vpop.f32.mrb[6].mxu0 }
0x1185   :  { %v1048_v17 = vpop.f32.mrb[7].mxu0  ;;  %v1047_v28 = vadd.f32 %v1046_v14, %v973_v22 }
0x1186   :  { %v1049_v18 = vadd.f32 %v1048_v17, %v974_v15 }
0x1187   :  { %v1328_v19 = vmul.f32 -1.442695, %v1047_v28 }
0x1188   :  { %1608 = vtanh.f32 %v1049_v18  ;;  %v1329_v26 = vmul.f32 -1.442695, %v1049_v18 }
0x1189   :  { %1610 = vpow2.f32 %v1328_v19 }
0x1192   :  { %v1609_v20 = vpop.eup %1608 }
0x1193   :  { %1066 = vrot.lane.b32.xlu0 %v1609_v20, %s1714_s21  ;;  %v1611_v32 = vpop.eup %1610 }
0x1194   :  { %v1057_v36 = vadd.f32 1.0, %v1611_v32 }
0x1196   :  { %1612 = vrcp.f32 %v1057_v36 }
0x11a0   :  { %v1613_v39 = vpop.eup %1612 }
0x11a1   :  { %v1064_v57 = vmul.f32 %v1613_v39, %v966_v5 }
0x1205   :  { %v1067_v21 = vpop.permute.xlu0 %1066 }
0x1206   :  { %v1069_v41 = vmul.f32 %v1613_v39, %v1067_v21 }
0x1208   :  { %1071 = vrot.lane.b32.xlu1 %v1069_v41, %s1714_s21 }
0x127a   :  { %v1072_v23 = vpop.permute.xlu1 %1071 }
0x127b   :  { %v1074_v24 = vadd.f32 %v1072_v23, %v1064_v57 }
0x127d   :  { %1614 = vtanh.f32 %v1074_v24 }
0x127e   :  { %1616 = vpow2.f32 %v1329_v26 }
0x1287   :  { %v1615_v25 = vpop.eup %1614 }
0x1288   :  { %1077 = vrot.lane.b32.xlu0 %v1615_v25, %s1714_s21  ;;  %v1617_v55 = vpop.eup %1616 }
0x1289   :  { %v1058_v27 = vadd.f32 1.0, %v1617_v55 }
0x128b   :  { %1618 = vrcp.f32 %v1058_v27 }
0x1295   :  { %v1619_v29 = vpop.eup %1618 }
0x12fa   :  { %v1078_v30 = vpop.permute.xlu0 %1077 }
0x12fb   :  { %v1080_v31 = vmul.f32 %v1619_v29, %v1078_v30 }
0x12fd   :  { %1330 = vmatmul.mubr.msk.f32.vlgmr.msra.gmra.mrb[8].mxu0 %vm206_vm1, %v1080_v31 }
0x13d0   :  { %v1150_v33 = vpop.f32.mrb[8].mxu0 }
0x13d1   :  { %v1151_v34 = vadd.f32 %v1150_v33, %v1871_v59  ;;  %v1152_v35 = vpop.f32.mrb[9].mxu0 }
0x13d2   :  { %v1153_v37 = vadd.f32 %v1152_v35, %v1873_v61  ;;  %v1185_v61 = vld [vmem:[%s2029_s6] sm:$0xff] }
0x13d3   :  { %v1331_v38 = vmul.f32 -1.442695, %v1151_v34  ;;  %v1504_v50 = vpack.c.bf16 %v1186_v62, %v1185_v61 }
0x13d4   :  { %1620 = vtanh.f32 %v1153_v37  ;;  %v1332_v53 = vmul.f32 -1.442695, %v1153_v37 }
0x13d5   :  { %1622 = vpow2.f32 %v1331_v38  ;;  %1505 = vmatpush3.bf16.msra.mxu1 %v1504_v50 }
0x13d6   :  { %1506 = vmatprep.subr.bf16.mxu1 %v1715_v49 }
0x13d9   :  { %1508 = vmatpush3.bf16.msra.mxu1 %v1507_v7 }
0x13de   :  { %v1621_v16 = vpop.eup %1620 }
0x13df   :  { %1170 = vrot.lane.b32.xlu1 %v1621_v16, %s1714_s21  ;;  %v1623_v40 = vpop.eup %1622 }
0x13e0   :  { %v1161_v42 = vadd.f32 1.0, %v1623_v40 }
0x13e2   :  { %1624 = vrcp.f32 %v1161_v42 }
0x13ec   :  { %v1625_v43 = vpop.eup %1624 }
0x13ed   :  { %v1168_v46 = vmul.f32 %v1625_v43, %v1074_v24 }
0x1451   :  { %v1171_v44 = vpop.permute.xlu1 %1170 }
0x1452   :  { %v1173_v45 = vmul.f32 %v1625_v43, %v1171_v44 }
0x1454   :  { %1175 = vrot.lane.b32.xlu0 %v1173_v45, %s1714_s21 }
0x14c6   :  { %v1176_v47 = vpop.permute.xlu0 %1175 }
0x14c7   :  { %v1178_v59 = vadd.f32 %v1176_v47, %v1168_v46 }
0x14c9   :  { %1626 = vtanh.f32 %v1178_v59 }
0x14ca   :  { %1628 = vpow2.f32 %v1332_v53 }
0x14d3   :  { %v1627_v52 = vpop.eup %1626 }
0x14d4   :  { %1181 = vrot.lane.b32.xlu1 %v1627_v52, %s1714_s21  ;;  %v1629_v54 = vpop.eup %1628 }
0x14d5   :  { %v1162_v56 = vadd.f32 1.0, %v1629_v54 }
0x14d7   :  { %1630 = vrcp.f32 %v1162_v56 }
0x14e1   :  { %v1631_v58 = vpop.eup %1630 }
0x1546   :  { %v1182_v60 = vpop.permute.xlu1 %1181 }
0x1547   :  { %v1184_v63 = vmul.f32 %v1631_v58, %v1182_v60 }
0x1549   :  { %1197 = vrot.lane.b32.xlu0 %v1184_v63, %s1717_s3 }
0x15bb   :  { %v1198_v1 = vpop.permute.xlu0 %1197 }
0x15bc   :  { %1349 = vmatmul.mubr.msk.f32.vlgmr.msra.gmra.mrb[14].mxu1 %vm81_vm0, %v1198_v1 }
0x168f   :  { %v1267_v2 = vpop.f32.mrb[14].mxu1 }
0x1690   :  { %v1268_v3 = vadd.f32 %v1333_v0, %v1267_v2  ;;  %v1350_v4 = vpop.f32.mrb[15].mxu1 }
0x1692   :  { %v1272_v5 = vsel %vm1271_vm3, %v1268_v3, -inf }
0x1693   :  { %1273 = vmax.xlane.f32.xlu1 %v1272_v5 }
0x1720   :  { %v1274_v6 = vpop.xlane.xlu1 %1273 }
0x1721   :  { %v1275_v8 = vsub.f32 %v1268_v3, %v1274_v6 }
0x1723   :  { %v1276_v9 = vmul.f32 1.442695, %v1275_v8 }
0x1725   :  { %1632 = vpow2.f32 %v1276_v9 }
0x172f   :  { %v1633_v10 = vpop.eup %1632 }
0x1730   :  { %v1278_v11 = vsel %vm1271_vm3, %v1633_v10, 0.0 }
0x1731   :  { %1279 = vadd.xlane.f32.xlu0 %v1278_v11 }
0x17be   :  { %v1280_v12 = vpop.xlane.xlu0 %1279 }
0x17bf   :  { %1634 = vlog2.f32 %v1280_v12 }
0x17c9   :  { %v1635_v13 = vpop.eup %1634 }
0x17ca   :  { %v1282_v14 = vmul.f32 0.6931472, %v1635_v13 }
0x17cc   :  { %v1283_v15 = vsub.f32 %v1275_v8, %v1282_v14 }
0x17ce   :  { %1284 = vst [vmem:[#allocation7] sm:$0x3] %v1283_v15 }
0x17cf   :  { %1691 = shalt.err (!%p1688_p6)
}
0x17d0   :  { %s1692_s11 = scalar_lea.hbm %s2031_s8, 32 }
0x17d1   :  { %p1693_p7 = scmp.ne.s32.totalorder %s2031_s8, %s1692_s11  ;;  %p1696_p8 = scmp.lt.u32.totalorder %s1692_s11, %s2031_s8 }
0x17d3   :  { %p1698_p9 = pnand %p1696_p8, %p1693_p7 }
0x17d5   :  { %1701 = shalt.err (!%p1698_p9)
}
0x17d6   :  { %1294 = dma.vmem_to_hbm [thread:$0]  %s1292_s9, 32, %s2031_s8, [#allocation4]  }
0x17d7   :  { %1706 = dma.done.wait [#allocation4], 32  }
0x17d8   :  { %1707 = vsyncadd [#allocation4], 4294967264 }
0x17d9   :  { %1298 = vsyncpa [#allocation3], 1 }
0x17da   :  { %1299 = vsyncpa [#allocation6], 1 }
0x17db   :  { %1300 = vsyncpa [#allocation4], 1 }

</bundles_post_ra>
